<compile_context>
chip_gen: v5e
topology: v5e:2x2
jax: 0.10.0
libtpu: 0.0.40
codegen_flags: <defaults>
</compile_context>

<pallas_src>
import functools

import jax
import jax.numpy as jnp
from jax import lax
from jax.experimental import pallas as pl
from jax.experimental.pallas import tpu as pltpu


def _round_up(x, m):
    return ((x + m - 1) // m) * m


def _constant_kernel_body(emb_ref, w0_ref, w1_ref, p_ref, out_ref, *, h0_dim, h1_dim):
    # emb_ref: (Bt, D) batch tile (f32 or bf16).  Weights are feature-major:
    # w0 (H0, D), w1 (H1, H0).  p_ref (H_max, 4) packs [b0 | b1 | b2 | w2].
    x = emb_ref[...]                                             # (Bt, D): no cast, no transpose

    b0 = p_ref[0:h0_dim, 0:1]                                    # (H0, 1)
    b1 = p_ref[0:h1_dim, 1:2]                                    # (H1, 1)
    b2 = p_ref[0:1, 2:3]                                         # (1, 1)
    w2 = p_ref[0:h1_dim, 3:4]                                    # (H1, 1)

    w0 = w0_ref[...]
    if w0.dtype != x.dtype:                                      # bf16 path: match MXU operand dtypes,
        w0 = w0.astype(x.dtype)                                  # accumulation stays f32 below.

    # Layer 0: contract D directly against the (Bt, D) tile -> (H0, Bt).  This avoids
    # the old explicit `.T` (XLU vxpose + lane-sparse VMEM copy).
    h0 = lax.dot_general(w0, x, dimension_numbers=(((1,), (1,)), ((), ())),
                         preferred_element_type=jnp.float32) + b0
    h0 = jnp.maximum(h0, 0.0)                                    # (H0, Bt) ReLU (dropout off in eval)

    h1 = jnp.dot(w1_ref[...], h0, preferred_element_type=jnp.float32) + b1
    h1 = jnp.maximum(h1, 0.0)                                    # (H1, Bt)

    # Final layer has a single output unit: VPU multiply + sublane (XLU) reduce,
    # avoiding an M=1 MXU matmul.
    y = jnp.sum(w2 * h1, axis=0, keepdims=True) + b2             # (1, Bt)

    variance = jnp.logaddexp(0.0, y)                             # numerically stable softplus
    out_ref[...] = variance * variance                           # K = variance**2, lane-dense store


def pack_params_for_kernel(params):
    """One-time repack of (w0,b0,w1,b1,w2,b2) [weights stored (in,out)] into kernel layout:
    feature-major weights (out,in) and a single (H_max, 4) operand [b0 | b1 | b2 | w2]."""
    w0, b0, w1, b1, w2, b2 = params
    w0_t = jnp.asarray(w0, jnp.float32).T                        # (H0, D)
    w1_t = jnp.asarray(w1, jnp.float32).T                        # (H1, H0)
    h0, h1 = w0_t.shape[0], w1_t.shape[0]
    h_max = max(h0, h1, 1)
    p = jnp.zeros((h_max, 4), jnp.float32)
    p = p.at[:h0, 0].set(jnp.asarray(b0, jnp.float32).reshape(-1))
    p = p.at[:h1, 1].set(jnp.asarray(b1, jnp.float32).reshape(-1))
    p = p.at[:1, 2].set(jnp.asarray(b2, jnp.float32).reshape(-1))
    p = p.at[:h1, 3].set(jnp.asarray(w2, jnp.float32).reshape(-1))
    return (w0_t, w1_t, p)


def _mlp_values_jax(emb, w0_t, w1_t, p_pack, h0_dim, h1_dim):
    """Plain-JAX path (same packed params) for tiny batches / single embeddings."""
    x = jnp.asarray(emb, jnp.float32)
    b0 = p_pack[:h0_dim, 0]
    b1 = p_pack[:h1_dim, 1]
    b2 = p_pack[0, 2]
    w2 = p_pack[:h1_dim, 3]
    h = jnp.maximum(x @ w0_t.T + b0, 0.0)
    h = jnp.maximum(h @ w1_t.T + b1, 0.0)
    y = h @ w2 + b2
    variance = jnp.logaddexp(0.0, y)
    return variance * variance


def constant_kernel_values(kernel_embeddings, packed_params, *, block_b=2048,
                           min_pallas_batch=64, use_core_parallel=False):
    """Evaluate K = softplus(MLP(emb))**2 for a batch of kernel embeddings.

    kernel_embeddings: (B, D) or (D,), f32 or bf16.  Returns (B,) float32.
    """
    w0_t, w1_t, p_pack = packed_params
    emb = jnp.asarray(kernel_embeddings)
    if emb.ndim == 1:
        emb = emb[None, :]
    B, D = emb.shape
    h0_dim, h1_dim = w0_t.shape[0], w1_t.shape[0]

    # Tiny batches: ~2K MACs/embedding is orders of magnitude below the pallas_call
    # launch + DMA fixed cost; let XLA fuse the plain JAX MLP instead.
    if B < min_pallas_batch:
        return _mlp_values_jax(emb, w0_t, w1_t, p_pack, h0_dim, h1_dim)

    # Batch tile: multiple of 128 lanes (lane-dense output), capped so smaller batches
    # don't over-pad.  At bb=2048 the embedding tile is ~256 KiB (f32) x 2 buffers +
    # <10 KiB of resident weights -- trivially inside every generation's scoped VMEM.
    bb = min(_round_up(max(block_b, 128), 128), _round_up(B, 128))
    num_blocks = pl.cdiv(B, bb)
    b_out = num_blocks * bb        # output rounded up; no jnp.pad of the input --
                                   # the partial last input block reads past B and
                                   # the garbage tail lanes are sliced off below.

    kernel = functools.partial(_constant_kernel_body, h0_dim=h0_dim, h1_dim=h1_dim)
    # On v7x pass use_core_parallel=True to split the batch axis across both
    # TensorCores; plain "parallel" elsewhere (no-op on single-TC chips).
    sem = pltpu.CORE_PARALLEL if use_core_parallel else "parallel"

    out = pl.pallas_call(
        kernel,
        out_shape=jax.ShapeDtypeStruct((1, b_out), jnp.float32),
        grid_spec=pltpu.PrefetchScalarGridSpec(
            num_scalar_prefetch=0,
            grid=(num_blocks,),
            in_specs=[
                pl.BlockSpec((bb, D), lambda i: (i, 0)),        # embeddings: tiled over batch
                pl.BlockSpec(w0_t.shape, lambda i: (0, 0)),     # weights: VMEM-resident
                pl.BlockSpec(w1_t.shape, lambda i: (0, 0)),
                pl.BlockSpec(p_pack.shape, lambda i: (0, 0)),   # packed [b0|b1|b2|w2]
            ],
            out_specs=pl.BlockSpec((1, bb), lambda i: (0, i)),  # lane-dense (1, Bt) output blocks
        ),
        compiler_params=pltpu.CompilerParams(dimension_semantics=(sem,)),
    )(emb, w0_t, w1_t, p_pack)
    return out[0, :B]


def constant_kernel_forward(X1, X2, kernel_embedding, packed_params):
    """Mirrors ConstantKernel.forward(X1, X2, kernel_embedding) in STANDARD eval mode.

    X1/X2 only contribute len() in the reference module and do not affect K.  A single
    embedding is far below the Pallas fixed cost, so this uses the fused JAX path.
    """
    del X1, X2
    w0_t, w1_t, p_pack = packed_params
    emb = jnp.asarray(kernel_embedding).reshape(1, -1)
    k = _mlp_values_jax(emb, w0_t, w1_t, p_pack, w0_t.shape[0], w1_t.shape[0])
    return k[0]


def init_mlp_params(key, in_dim, hidden_dims, out_dim):
    """Deterministic PyTorch-Linear-style init (uniform +-1/sqrt(fan_in)), weights as (in, out)."""
    dims = [in_dim] + list(hidden_dims) + [out_dim]
    params = []
    for i in range(len(dims) - 1):
        fan_in, fan_out = dims[i], dims[i + 1]
        key, kw, kb = jax.random.split(key, 3)
        bound = 1.0 / jnp.sqrt(fan_in)
        w = jax.random.uniform(kw, (fan_in, fan_out), jnp.float32, -bound, bound)
        b = jax.random.uniform(kb, (1, fan_out), jnp.float32, -bound, bound)
        params += [w, b]
    return tuple(params)


def reference_values(kernel_embeddings, params):
    """Pure-JAX reference on the raw (unpacked) params: K = softplus(MLP(emb))**2."""
    w0, b0, w1, b1, w2, b2 = params
    x = jnp.asarray(kernel_embeddings, jnp.float32)
    if x.ndim == 1:
        x = x[None, :]
    h = jnp.maximum(x @ w0 + b0, 0.0)
    h = jnp.maximum(h @ w1 + b1, 0.0)
    y = (h @ w2 + b2)[:, 0]
    variance = jax.nn.softplus(y)
    return variance ** 2


if __name__ == "__main__":
    key = jax.random.PRNGKey(0)
    k_emb, k_batch, k_tail, k_x1, k_x2, k_mlp = jax.random.split(key, 6)

    kernel_embedding_dim = 32
    dim_hidden_layer_list = [32, 32]   # two hidden layers
    num_params = 1                     # ConstantKernel.num_params

    params = init_mlp_params(k_mlp, kernel_embedding_dim, dim_hidden_layer_list, num_params)
    packed = pack_params_for_kernel(params)

    # --- module-parity single-embedding call (X1/X2 only contribute len()) ---
    n1, n2, d_in = 8, 8, 4
    X1 = jax.random.normal(k_x1, (n1, d_in), jnp.float32)
    X2 = jax.random.normal(k_x2, (n2, d_in), jnp.float32)
    kernel_embedding = jax.random.normal(k_emb, (kernel_embedding_dim,), jnp.float32)

    K = constant_kernel_forward(X1, X2, kernel_embedding, packed)
    K = jax.block_until_ready(K)
    K_ref = reference_values(kernel_embedding, params)[0]
    assert jnp.allclose(K, K_ref, rtol=1e-5, atol=1e-6), (K, K_ref)

    # --- batched Pallas path, f32, two grid steps (block_b=128 forces the tiling) ---
    B = 256
    emb_batch = jax.random.normal(k_batch, (B, kernel_embedding_dim), jnp.float32)
    K_batch = constant_kernel_values(emb_batch, packed, block_b=128)
    K_batch = jax.block_until_ready(K_batch)
    K_batch_ref = reference_values(emb_batch, params)
    assert K_batch.shape == (B,)
    assert jnp.allclose(K_batch, K_batch_ref, rtol=1e-5, atol=1e-6), (K_batch, K_batch_ref)

    # --- batched Pallas path, bf16 input, B not a multiple of 128 (partial last block,
    #     no wrapper-side jnp.pad), default large tile -> single grid step ---
    B2 = 200
    emb_tail = jax.random.normal(k_tail, (B2, kernel_embedding_dim), jnp.float32)
    emb_tail_bf16 = emb_tail.astype(jnp.bfloat16)
    K_tail = constant_kernel_values(emb_tail_bf16, packed)          # block_b=2048 default
    K_tail = jax.block_until_ready(K_tail)
    K_tail_ref = reference_values(emb_tail_bf16.astype(jnp.float32), params)
    assert K_tail.shape == (B2,)
    assert bool(jnp.all(jnp.isfinite(K_tail)))
    assert jnp.allclose(K_tail, K_tail_ref, rtol=1e-1, atol=5e-2), (K_tail, K_tail_ref)

    # --- tiny-batch bypass (pure JAX, no pallas_call) ---
    K_small = constant_kernel_values(emb_batch[:8], packed)
    K_small = jax.block_until_ready(K_small)
    assert jnp.allclose(K_small, K_batch_ref[:8], rtol=1e-5, atol=1e-6)

    print("KERNEL_OK")
</pallas_src>

<mosaic_0001>
module attributes {stable_mosaic.version = 11 : i64} {
  func.func @_constant_kernel_body(%arg0: i32, %arg1: memref<128x32xf32, #tpu.memory_space<vmem>>, %arg2: memref<32x32xf32, #tpu.memory_space<vmem>>, %arg3: memref<32x32xf32, #tpu.memory_space<vmem>>, %arg4: memref<32x4xf32, #tpu.memory_space<vmem>>, %arg5: memref<1x128xf32, #tpu.memory_space<vmem>>) attributes {dimension_semantics = [#tpu.dimension_semantics<parallel>], iteration_bounds = array<i64: 2>, scalar_prefetch = 0 : i64, scratch_operands = 0 : i64, tpu.core_type = #tpu.core_type<tc>, window_params = [{transform_indices = @transform_0, window_bounds = array<i64: 128, 32>}, {pipeline_mode = #tpu.pipeline_mode<synchronous>, transform_indices = @transform_1, window_bounds = array<i64: 32, 32>}, {pipeline_mode = #tpu.pipeline_mode<synchronous>, transform_indices = @transform_2, window_bounds = array<i64: 32, 32>}, {pipeline_mode = #tpu.pipeline_mode<synchronous>, transform_indices = @transform_3, window_bounds = array<i64: 32, 4>}, {transform_indices = @transform_4, window_bounds = array<i64: 1, 128>}]} {
    %c0 = arith.constant 0 : index
    %c0_0 = arith.constant 0 : index
    %0 = vector.load %arg1[%c0, %c0_0] : memref<128x32xf32, #tpu.memory_space<vmem>>, vector<128x32xf32>
    %c0_1 = arith.constant 0 : index
    %c0_2 = arith.constant 0 : index
    %1 = vector.load %arg4[%c0_1, %c0_2] : memref<32x4xf32, #tpu.memory_space<vmem>>, vector<32x1xf32>
    %c0_3 = arith.constant 0 : index
    %c1 = arith.constant 1 : index
    %2 = vector.load %arg4[%c0_3, %c1] : memref<32x4xf32, #tpu.memory_space<vmem>>, vector<32x1xf32>
    %c0_4 = arith.constant 0 : index
    %c2 = arith.constant 2 : index
    %3 = vector.load %arg4[%c0_4, %c2] : memref<32x4xf32, #tpu.memory_space<vmem>>, vector<1x1xf32>
    %c0_5 = arith.constant 0 : index
    %c3 = arith.constant 3 : index
    %4 = vector.load %arg4[%c0_5, %c3] : memref<32x4xf32, #tpu.memory_space<vmem>>, vector<32x1xf32>
    %c0_6 = arith.constant 0 : index
    %c0_7 = arith.constant 0 : index
    %5 = vector.load %arg2[%c0_6, %c0_7] : memref<32x32xf32, #tpu.memory_space<vmem>>, vector<32x32xf32>
    %cst = arith.constant dense<0.000000e+00> : vector<32x128xf32>
    %6 = tpu.matmul %5, %0, %cst {dimension_numbers = #tpu.dot_dimension_numbers<[1], [1], [0], [0], [0, 0, 1, 0], [], []>} : vector<32x32xf32>, vector<128x32xf32>, vector<32x128xf32> -> vector<32x128xf32>
    %7 = vector.broadcast %1 : vector<32x1xf32> to vector<32x128xf32>
    %8 = arith.addf %6, %7 : vector<32x128xf32>
    %cst_8 = arith.constant 0.000000e+00 : f32
    %9 = vector.broadcast %cst_8 : f32 to vector<32x128xf32>
    %10 = arith.maximumf %8, %9 : vector<32x128xf32>
    %c0_9 = arith.constant 0 : index
    %c0_10 = arith.constant 0 : index
    %11 = vector.load %arg3[%c0_9, %c0_10] : memref<32x32xf32, #tpu.memory_space<vmem>>, vector<32x32xf32>
    %cst_11 = arith.constant dense<0.000000e+00> : vector<32x128xf32>
    %12 = tpu.matmul %11, %10, %cst_11 {dimension_numbers = #tpu.dot_dimension_numbers<[1], [0], [0], [1], [0, 0, 1, 1], [], []>} : vector<32x32xf32>, vector<32x128xf32>, vector<32x128xf32> -> vector<32x128xf32>
    %13 = vector.broadcast %2 : vector<32x1xf32> to vector<32x128xf32>
    %14 = arith.addf %12, %13 : vector<32x128xf32>
    %cst_12 = arith.constant 0.000000e+00 : f32
    %15 = vector.broadcast %cst_12 : f32 to vector<32x128xf32>
    %16 = arith.maximumf %14, %15 : vector<32x128xf32>
    %17 = vector.broadcast %4 : vector<32x1xf32> to vector<32x128xf32>
    %18 = arith.mulf %17, %16 : vector<32x128xf32>
    %cst_13 = arith.constant dense<0.000000e+00> : vector<128xf32>
    %19 = vector.multi_reduction <add>, %18, %cst_13 [0] : vector<32x128xf32> to vector<128xf32>
    %20 = vector.shape_cast %19 : vector<128xf32> to vector<1x128xf32>
    %21 = vector.broadcast %3 : vector<1x1xf32> to vector<1x128xf32>
    %22 = arith.addf %20, %21 : vector<1x128xf32>
    %cst_14 = arith.constant 0.000000e+00 : f32
    %23 = vector.broadcast %cst_14 : f32 to vector<1x128xf32>
    %24 = arith.maximumf %23, %22 : vector<1x128xf32>
    %25 = vector.broadcast %cst_14 : f32 to vector<1x128xf32>
    %26 = arith.subf %25, %22 : vector<1x128xf32>
    %27 = arith.cmpf one, %26, %26 : vector<1x128xf32>
    %28 = vector.broadcast %cst_14 : f32 to vector<1x128xf32>
    %29 = arith.addf %28, %22 : vector<1x128xf32>
    %30 = math.absf %26 : vector<1x128xf32>
    %cst_15 = arith.constant 0.000000e+00 : f32
    %31 = vector.broadcast %cst_15 : f32 to vector<1x128xf32>
    %32 = arith.subf %31, %30 : vector<1x128xf32>
    %33 = math.exp %32 : vector<1x128xf32>
    %34 = math.log1p %33 : vector<1x128xf32>
    %35 = arith.addf %24, %34 : vector<1x128xf32>
    %36 = arith.select %27, %29, %35 : vector<1x128xi1>, vector<1x128xf32>
    %37 = arith.mulf %36, %36 : vector<1x128xf32>
    %c0_16 = arith.constant 0 : index
    %c0_17 = arith.constant 0 : index
    %38 = vector.load %arg5[%c0_16, %c0_17] : memref<1x128xf32, #tpu.memory_space<vmem>>, vector<1x128xf32>
    tpu.vector_store %arg5[%c0_16, %c0_17], %37 {strides = array<i32>} : memref<1x128xf32, #tpu.memory_space<vmem>>, vector<1x128xf32>,
    return
  }
  func.func @transform_0(%arg0: i32) -> (i32, i32) {
    %c0_i32 = arith.constant 0 : i32
    %c0_i32_0 = arith.constant 0 : i32
    return %arg0, %c0_i32 : i32, i32
  }
  func.func @transform_1(%arg0: i32) -> (i32, i32) {
    %c0_i32 = arith.constant 0 : i32
    %c0_i32_0 = arith.constant 0 : i32
    %c0_i32_1 = arith.constant 0 : i32
    return %c0_i32, %c0_i32_0 : i32, i32
  }
  func.func @transform_2(%arg0: i32) -> (i32, i32) {
    %c0_i32 = arith.constant 0 : i32
    %c0_i32_0 = arith.constant 0 : i32
    %c0_i32_1 = arith.constant 0 : i32
    return %c0_i32, %c0_i32_0 : i32, i32
  }
  func.func @transform_3(%arg0: i32) -> (i32, i32) {
    %c0_i32 = arith.constant 0 : i32
    %c0_i32_0 = arith.constant 0 : i32
    %c0_i32_1 = arith.constant 0 : i32
    return %c0_i32, %c0_i32_0 : i32, i32
  }
  func.func @transform_4(%arg0: i32) -> (i32, i32) {
    %c0_i32 = arith.constant 0 : i32
    %c0_i32_0 = arith.constant 0 : i32
    return %c0_i32, %arg0 : i32, i32
  }
}

</mosaic_0001>

<bundles_post_ra>
// kernel: tpu_custom_call.1
= control target key start
LH: loop header
LB: loop body
LE: loop exit
PB: predicated region body
PF: predicated region fallthrough
CT: control target
= control target key end

     0   :  { %9 = vsyncpa [#allocation3], 0  ;;  %s941_s0 = inlined_call_operand.vmem [shape: f32[256,32], index: 0, kind: input, shape index: {}]   ;;  %s942_s1 = inlined_call_operand.vmem [shape: f32[32,32], index: 1, kind: input, shape index: {}]   ;;  %s943_s2 = inlined_call_operand.vmem [shape: f32[32,32], index: 2, kind: input, shape index: {}]   ;;  %s944_s3 = inlined_call_operand.vmem [shape: f32[32,4], index: 3, kind: input, shape index: {}]   ;;  %s945_s4 = inlined_call_operand.hbm [shape: f32[1,256], index: 4, kind: output, shape index: {}]  }
   0x1   :  { %11 = vsyncpa [#allocation3 + $0x1], 0  ;;  %s739_s15 = smov 0   ;;  %s741_s16 = smov 0  }
   0x2   :  { %s743_s17 = smov 0   ;;  %s745_s18 = smov 0  }
   0x3 LB: > { %s760_s19 = sadd.s32 4294967295, %s708_s18   ;;  %s525_s20 = sadd.s32 4294967294, %s708_s18   ;;  %s708_s18 = sphi %s745_s18, %s951_s18   ;;  %s704_s17 = sphi %s743_s17, %s950_s17   ;;  %s700_s16 = sphi %s741_s16, %s949_s16   ;;  %s696_s15 = sphi %s739_s15, %s948_s15  }
   0x4   : > { %s764_s21 = sadd.s32 1, %s708_s18   ;;  %s113_s22 = sadd.s32 1, %s704_s17 }
   0x5   : > { %s110_s23 = ssub.s32 %s708_s18, %s764_s21  ;;  %p123_p0 = scmp.ne.s32.totalorder %s704_s17, %s700_s16 }
   0x6   : > { %p111_p1 = scmp.eq.s32.totalorder %s110_s23, 0  ;;  %p124_p2 = scmp.eq.s32.totalorder %s760_s19, 1 }
   0x7   : > { %p129_p3 = scmp.ne.s32.totalorder %s700_s16, %s696_s15  ;;  %p130_p4 = scmp.eq.s32.totalorder %s525_s20, 1 }
   0x8   : > { %s775_s24 = scalar_select %p111_p1, %s704_s17, %s113_s22  }
   0x9   : > { %p777_p5 = por %p124_p2, %p123_p0  ;;  %p781_p6 = por %p130_p4, %p129_p3 }
   0xa   : > { %p528_p7 = scmp.ge.s32.totalorder %s708_s18, 1  ;;  %p166_p8 = scmp.lt.s32.totalorder %s708_s18, 3 }
   0xc   : > { %p167_p9 = pnand %p528_p7, %p166_p8 }
   0xd   : > { %s529_s27 = sshll.u32 (!%p167_p9), %s760_s19, 4  ;;  %s189_s20 = sand.u32 (!%p167_p9), 1, %s700_s16  }
   0xe   : > { %170 = sbr.rel (%p167_p9) target bundleno = 444 (0x1bc), region = 36  ;;  %p192_p10 = scmp.lt.s32.totalorder (!%p167_p9), %s529_s27, 31 }
   0xf   : > { %s666_s9 = scalar_lea.hbm (!%p167_p9), %s945_s4, 2 }
  0x13   : > { %s953_s27 = smov (!%p192_p10, %s529_s27), 31  ;;  %vm242_vm0 = vcmask 261120   ;;  %v710_v10 = vmov 0   ;;  %v216_v12 = vld [vmem:[%s944_s3 + $0x18] sm:$0xff]  ;;  %v214_v13 = vld [vmem:[%s944_s3 + $0x8] sm:$0xff]  ;;  %v851_v16 = vld [vmem:[%s944_s3 + $0x10] sm:$0xff] }
  0x14   : > { %s530_s28 = sshll.u32 %s953_s27, 3  ;;  %632 = vset.pattern.permute.xlu0 %v710_v10  ;;  %633 = vset.pattern.permute.xlu1 %v710_v10  ;;  %v213_v17 = vld [vmem:[%s944_s3] sm:$0xff]  ;;  %v220_v21 = vld [vmem:[%s942_s1 + $0x10] sm:$0xff]  ;;  %v219_v22 = vld [vmem:[%s942_s1 + $0x8] sm:$0xff]  ;;  %v711_v26 = vmov 1   ;;  %v712_v30 = vmov 3   ;;  %s466_s27 = scalar_lea.hbm %s945_s4, %s760_s19 }
  0x15   : > { %s791_s5 = scalar_lea.vmem %s941_s0, %s530_s28  ;;  %239 = vperm.xlu0 %632, %v216_v12   ;;  %229 = vperm.xlu1 %633, %v214_v13   ;;  %v218_v23 = vld [vmem:[%s942_s1] sm:$0xff]  ;;  %v221_v24 = vld [vmem:[%s942_s1 + $0x18] sm:$0xff]  ;;  %v713_v43 = vmov 2   ;;  %v337_v46 = vld [vmem:[%s943_s2 + $0x8] sm:$0xff]  ;;  %s190_s28 = scalar_lea.vmem [#allocation2], %s189_s20 }
  0x16   : > { %v212_v0 = vld [vmem:[%s791_s5 + $0x78] sm:$0xff]  ;;  %v211_v1 = vld [vmem:[%s791_s5 + $0x70] sm:$0xff]  ;;  %v210_v2 = vld [vmem:[%s791_s5 + $0x68] sm:$0xff]  ;;  %634 = vset.pattern.permute.xlu2 %v711_v26  ;;  %s468_s29 = sshll.u32 %s190_s28, 4  ;;  %s470_s30 = sshll.u32 %s466_s27, 4  ;;  %s469_s29 = int_to_ptr.vmem [resolvable:$true] %s468_s29  ;;  %s471_s30 = int_to_ptr.hbm [resolvable:$true] %s470_s30 }
  0x17   : > { %558 = vmatpush.xpose.msk.msra.mxu3 %vm242_vm0, %v212_v0  ;;  %557 = vmatpush.xpose.msk.msra.mxu2 %vm242_vm0, %v212_v0  ;;  %v209_v3 = vld [vmem:[%s791_s5 + $0x60] sm:$0xff]  ;;  %v208_v4 = vld [vmem:[%s791_s5 + $0x58] sm:$0xff]  ;;  %v207_v5 = vld [vmem:[%s791_s5 + $0x50] sm:$0xff]  ;;  %s660_s6 = sshra.s32 %s471_s30, 4  ;;  %s661_s6 = int_to_ptr.hbm [resolvable:$true] %s660_s6 }
  0x18   : > { %531 = vmatpush.xpose.msk.msra.mxu0 %vm242_vm0, %v212_v0  ;;  %v206_v6 = vld [vmem:[%s791_s5 + $0x48] sm:$0xff]  ;;  %v205_v7 = vld [vmem:[%s791_s5 + $0x40] sm:$0xff]  ;;  %v204_v8 = vld [vmem:[%s791_s5 + $0x38] sm:$0xff]  ;;  %341 = vperm.xlu2 %634, %v213_v17   ;;  %s662_s7 = scalar_lea.hbm %s661_s6, 1  ;;  %p667_p0 = scmp.lt.s32.totalorder %s661_s6, %s945_s4 }
  0x19   : > { %v203_v9 = vld [vmem:[%s791_s5 + $0x30] sm:$0xff]  ;;  %v202_v11 = vld [vmem:[%s791_s5 + $0x28] sm:$0xff]  ;;  %v201_v14 = vld [vmem:[%s791_s5 + $0x20] sm:$0xff]  ;;  %p663_p11 = scmp.ne.s32.totalorder %s661_s6, %s662_s7  ;;  %p668_p1 = scmp.lt.s32.totalorder %s666_s9, %s662_s7 }
  0x1a   : > { %v200_v15 = vld [vmem:[%s791_s5 + $0x18] sm:$0xff]  ;;  %v199_v18 = vld [vmem:[%s791_s5 + $0x10] sm:$0xff]  ;;  %v198_v19 = vld [vmem:[%s791_s5 + $0x8] sm:$0xff] }
  0x1b   : > { %560 = vmatpush.xpose.msk.msra.mxu3 %vm242_vm0, %v211_v1  ;;  %559 = vmatpush.xpose.msk.msra.mxu2 %vm242_vm0, %v211_v1  ;;  %v197_v20 = vld [vmem:[%s791_s5] sm:$0xff]  ;;  %v338_v47 = vld [vmem:[%s943_s2 + $0x10] sm:$0xff]  ;;  %v339_v48 = vld [vmem:[%s943_s2 + $0x18] sm:$0xff]  ;;  %s458_s5 = scalar_lea.sflag [#allocation3], %s189_s20  ;;  %p664_p12 = pnand %p663_p11, %p777_p5 }
  0x1c   : > { %532 = vmatpush.xpose.msk.msra.mxu0 %vm242_vm0, %v211_v1  ;;  %v217_v41 = vld [vmem:[%s944_s3] sm:$0x1]  ;;  %p669_p2 = por %p668_p1, %p667_p0 }
  0x1d   : > { %234 = vperm.xlu0 %632, %v851_v16   ;;  %224 = vperm.xlu1 %633, %v213_v17   ;;  %v336_v45 = vld [vmem:[%s943_s2] sm:$0xff]  ;;  %p665_p13 = pneg %p664_p12 }
  0x1f   : > { %562 = vmatpush.xpose.msk.msra.mxu3 %vm242_vm0, %v210_v2  ;;  %561 = vmatpush.xpose.msk.msra.mxu2 %vm242_vm0, %v210_v2  ;;  %p670_p3 = pnand %p669_p2, %p665_p13 }
  0x20   : > { %533 = vmatpush.xpose.msk.msra.mxu0 %vm242_vm0, %v210_v2  ;;  %345 = vperm.xlu2 %634, %v214_v13  }
  0x23   : > { %564 = vmatpush.xpose.msk.msra.mxu3 %vm242_vm0, %v209_v3  ;;  %563 = vmatpush.xpose.msk.msra.mxu2 %vm242_vm0, %v209_v3 }
  0x24   : > { %534 = vmatpush.xpose.msk.msra.mxu0 %vm242_vm0, %v209_v3 }
  0x25   : > { %636 = vset.pattern.permute.xlu1 %v711_v26  ;;  %635 = vset.pattern.permute.xlu0 %v711_v26 }
  0x26   : > { %353 = vperm.xlu1 %636, %v216_v12   ;;  %349 = vperm.xlu0 %635, %v851_v16  }
  0x27   : > { %566 = vmatpush.xpose.msk.msra.mxu3 %vm242_vm0, %v208_v4  ;;  %565 = vmatpush.xpose.msk.msra.mxu2 %vm242_vm0, %v208_v4 }
  0x28   : > { %535 = vmatpush.xpose.msk.msra.mxu0 %vm242_vm0, %v208_v4  ;;  %637 = vset.pattern.permute.xlu2 %v712_v30 }
  0x29   : > { %402 = vperm.xlu2 %637, %v213_v17  }
  0x2b   : > { %568 = vmatpush.xpose.msk.msra.mxu3 %vm242_vm0, %v207_v5  ;;  %567 = vmatpush.xpose.msk.msra.mxu2 %vm242_vm0, %v207_v5 }
  0x2c   : > { %536 = vmatpush.xpose.msk.msra.mxu0 %vm242_vm0, %v207_v5 }
  0x2e   : > { %638 = vset.pattern.permute.xlu1 %v712_v30  ;;  %639 = vset.pattern.permute.xlu0 %v712_v30 }
  0x2f   : > { %570 = vmatpush.xpose.msk.msra.mxu3 %vm242_vm0, %v206_v6  ;;  %569 = vmatpush.xpose.msk.msra.mxu2 %vm242_vm0, %v206_v6 }
  0x30   : > { %537 = vmatpush.xpose.msk.msra.mxu0 %vm242_vm0, %v206_v6  ;;  %406 = vperm.xlu1 %638, %v214_v13  }
  0x31   : > { %414 = vperm.xlu0 %639, %v216_v12   ;;  %410 = vperm.xlu2 %637, %v851_v16  }
  0x33   : > { %572 = vmatpush.xpose.msk.msra.mxu3 %vm242_vm0, %v205_v7  ;;  %571 = vmatpush.xpose.msk.msra.mxu2 %vm242_vm0, %v205_v7 }
  0x34   : > { %538 = vmatpush.xpose.msk.msra.mxu0 %vm242_vm0, %v205_v7 }
  0x37   : > { %574 = vmatpush.xpose.msk.msra.mxu3 %vm242_vm0, %v204_v8  ;;  %573 = vmatpush.xpose.msk.msra.mxu2 %vm242_vm0, %v204_v8 }
  0x38   : > { %539 = vmatpush.xpose.msk.msra.mxu0 %vm242_vm0, %v204_v8  ;;  %640 = vset.pattern.permute.xlu1 %v713_v43 }
  0x39   : > { %432 = vperm.xlu1 %640, %v217_v41   ;;  %641 = vset.pattern.permute.xlu0 %v713_v43 }
  0x3b   : > { %576 = vmatpush.xpose.msk.msra.mxu3 %vm242_vm0, %v203_v9  ;;  %575 = vmatpush.xpose.msk.msra.mxu2 %vm242_vm0, %v203_v9 }
  0x3c   : > { %540 = vmatpush.xpose.msk.msra.mxu0 %vm242_vm0, %v203_v9 }
  0x3f   : > { %578 = vmatpush.xpose.msk.msra.mxu3 %vm242_vm0, %v202_v11  ;;  %577 = vmatpush.xpose.msk.msra.mxu2 %vm242_vm0, %v202_v11 }
  0x40   : > { %541 = vmatpush.xpose.msk.msra.mxu0 %vm242_vm0, %v202_v11 }
  0x43   : > { %580 = vmatpush.xpose.msk.msra.mxu3 %vm242_vm0, %v201_v14  ;;  %579 = vmatpush.xpose.msk.msra.mxu2 %vm242_vm0, %v201_v14 }
  0x44   : > { %542 = vmatpush.xpose.msk.msra.mxu0 %vm242_vm0, %v201_v14 }
  0x47   : > { %582 = vmatpush.xpose.msk.msra.mxu3 %vm242_vm0, %v200_v15  ;;  %581 = vmatpush.xpose.msk.msra.mxu2 %vm242_vm0, %v200_v15 }
  0x48   : > { %543 = vmatpush.xpose.msk.msra.mxu0 %vm242_vm0, %v200_v15 }
  0x4b   : > { %584 = vmatpush.xpose.msk.msra.mxu3 %vm242_vm0, %v199_v18  ;;  %583 = vmatpush.xpose.msk.msra.mxu2 %vm242_vm0, %v199_v18 }
  0x4c   : > { %544 = vmatpush.xpose.msk.msra.mxu0 %vm242_vm0, %v199_v18 }
  0x4f   : > { %586 = vmatpush.xpose.msk.msra.mxu3 %vm242_vm0, %v198_v19  ;;  %585 = vmatpush.xpose.msk.msra.mxu2 %vm242_vm0, %v198_v19 }
  0x50   : > { %545 = vmatpush.xpose.msk.msra.mxu0 %vm242_vm0, %v198_v19 }
  0x53   : > { %588 = vmatpush.xpose.msk.msra.mxu3 %vm242_vm0, %v197_v20  ;;  %587 = vmatpush.xpose.msk.msra.mxu2 %vm242_vm0, %v197_v20 }
  0x54   : > { %546 = vmatpush.xpose.msk.msra.mxu0 %vm242_vm0, %v197_v20 }
  0x56   : > { %549 = vmatmul.msk.f32.vlgmr.msra.gmra.mxu3 %vm242_vm0, %v220_v21  ;;  %548 = vmatmul.msk.f32.vlgmr.msra.gmra.mxu2 %vm242_vm0, %v219_v22 }
  0x57   : > { %547 = vmatmul.msk.f32.vlgmr.msra.gmra.mxu0 %vm242_vm0, %v218_v23 }
  0x5e   : > { %550 = vmatmul.msk.f32.gmra.mxu3 %vm242_vm0, %v221_v24 }
  0x72   : > { %v342_v49 = vpop.permute.xlu2 %341 }
  0x7a   : > { %v346_v51 = vpop.permute.xlu2 %345 }
  0x83   : > { %v403_v56 = vpop.permute.xlu2 %402 }
  0x87   : > { %v240_v25 = vpop.permute.xlu0 %239  ;;  %v230_v27 = vpop.permute.xlu1 %229 }
  0x8b   : > { %v411_v1 = vpop.permute.xlu2 %410 }
  0x8f   : > { %v235_v29 = vpop.permute.xlu0 %234  ;;  %v225_v35 = vpop.permute.xlu1 %224 }
  0x98   : > { %v354_v53 = vpop.permute.xlu1 %353  ;;  %v350_v54 = vpop.permute.xlu0 %349 }
  0xa2   : > { %v407_v61 = vpop.permute.xlu1 %406 }
  0xa3   : > { %v415_v6 = vpop.permute.xlu0 %414 }
  0xab   : > { %v433_v17 = vpop.permute.xlu1 %432 }
  0xd4   : > { %v320_v36 = vpop.f32.mrf.mxu0 }
  0xd5   : > { %v321_v40 = vadd.f32 %v320_v36, %v225_v35 }
  0xd7   : > { %v332_v44 = vmax.f32 %v321_v40, 0.0 }
  0xd9   : > { %v326_v28 = vpop.f32.mrf.mxu3  ;;  %v323_v31 = vpop.f32.mrf.mxu2 }
  0xda   : > { %v327_v33 = vadd.f32 %v326_v28, %v235_v29  ;;  %v324_v37 = vadd.f32 %v323_v31, %v230_v27 }
  0xdc   : > { %v334_v39 = vmax.f32 %v327_v33, 0.0  ;;  %v333_v42 = vmax.f32 %v324_v37, 0.0 }
  0xe1   : > { %v329_v32 = vpop.f32.mrf.mxu3 }
  0xe2   : > { %v330_v34 = vadd.f32 %v329_v32, %v240_v25 }
  0xe4   : > { %v335_v38 = vmax.f32 %v330_v34, 0.0 }
  0xe6   : > { %380 = vmatpush.msra.mxu1 %v335_v38 }
  0xe8   : > { %381 = vmatpush.msra.mxu1 %v334_v39 }
  0xea   : > { %382 = vmatpush.msra.mxu1 %v333_v42 }
  0xec   : > { %383 = vmatpush.msra.mxu1 %v332_v44 }
  0xed   : > { %551 = vmatmul.msk.f32.vlgmr.msra.gmra.mxu1 %vm242_vm0, %v336_v45 }
  0xf5   : > { %552 = vmatmul.msk.f32.gmra.mxu1 %vm242_vm0, %v337_v46 }
  0xfd   : > { %553 = vmatmul.msk.f32.gmra.mxu1 %vm242_vm0, %v338_v47 }
 0x105   : > { %554 = vmatmul.msk.f32.gmra.mxu1 %vm242_vm0, %v339_v48 }
 0x16a   : > { %v385_v50 = vpop.f32.mrf.mxu1 }
 0x16b   : > { %v386_v58 = vadd.f32 %v385_v50, %v342_v49 }
 0x16d   : > { %v397_v62 = vmax.f32 %v386_v58, 0.0 }
 0x16f   : > { %v417_v3 = vmul.f32 %v403_v56, %v397_v62 }
 0x172   : > { %v388_v52 = vpop.f32.mrf.mxu1 }
 0x173   : > { %v389_v55 = vadd.f32 %v388_v52, %v346_v51 }
 0x175   : > { %v398_v60 = vmax.f32 %v389_v55, 0.0 }
 0x177   : > { %v418_v0 = vmul.f32 %v407_v61, %v398_v60 }
 0x179   : > { %v421_v7 = vadd.f32 %v418_v0, %v417_v3 }
 0x17a   : > { %v391_v57 = vpop.f32.mrf.mxu1 }
 0x17b   : > { %v392_v59 = vadd.f32 %v391_v57, %v350_v54 }
 0x17d   : > { %v399_v63 = vmax.f32 %v392_v59, 0.0 }
 0x17f   : > { %v419_v4 = vmul.f32 %v411_v1, %v399_v63 }
 0x181   : > { %v422_v9 = vadd.f32 %v421_v7, %v419_v4 }
 0x182   : > { %v394_v2 = vpop.f32.mrf.mxu1 }
 0x183   : > { %v395_v5 = vadd.f32 %v394_v2, %v354_v53 }
 0x185   : > { %v400_v8 = vmax.f32 %v395_v5, 0.0 }
 0x187   : > { %v420_v10 = vmul.f32 %v415_v6, %v400_v8 }
 0x189   : > { %v423_v11 = vadd.f32 %v422_v9, %v420_v10 }
 0x18b   : > { %v424_v12 = vrot.slane %v423_v11, 4 }
 0x18d   : > { %v425_v13 = vadd.f32 %v424_v12, %v423_v11 }
 0x18f   : > { %v426_v14 = vrot.slane %v425_v13, 2 }
 0x191   : > { %v427_v15 = vadd.f32 %v426_v14, %v425_v13 }
 0x193   : > { %v428_v16 = vrot.slane %v427_v15, 1 }
 0x195   : > { %v429_v18 = vadd.f32 %v428_v16, %v427_v15 }
 0x197   : > { %v435_v19 = vadd.f32 %v433_v17, %v429_v18 }
 0x199   : > { %v437_v20 = vsub.f32 0.0, %v435_v19  ;;  %v436_v32 = vmax.f32 %v435_v19, 0.0 }
 0x19b   : > { %v440_v21 = vand.u32 2147483647, %v437_v20  ;;  %vm438_vm2 = vcmp.ne.f32.partialorder %v437_v20, %v437_v20 }
 0x19d   : > { %v441_v22 = vsub.f32 0.0, %v440_v21 }
 0x19f   : > { %v442_v23 = vmul.f32 1.442695, %v441_v22 }
 0x1a1   : > { %642 = vpow2.f32 %v442_v23 }
 0x1a7   : > { %v643_v24 = vpop.eup %642 }
 0x1a8   : > { %v444_v25 = vadd.f32 1.0, %v643_v24  ;;  %v447_v26 = vmul.f32 -0.5, %v643_v24  ;;  %v450_v28 = vand.u32 2147483647, %v643_v24 }
 0x1aa   : > { %644 = vlog2.f32 %v444_v25  ;;  %v448_v27 = vadd.f32 1.0, %v447_v26  ;;  %vm451_vm1 = vcmp.lt.f32.partialorder %v450_v28, 0.0004427343 }
 0x1ac   : > { %v449_v31 = vmul.f32 %v643_v24, %v448_v27 }
 0x1b0   : > { %v645_v29 = vpop.eup %644 }
 0x1b1   : > { %v446_v30 = vmul.f32 0.6931472, %v645_v29 }
 0x1b3   : > { %v452_v33 = vsel %vm451_vm1, %v449_v31, %v446_v30 }
 0x1b4   : > { %v453_v34 = vadd.f32 %v452_v33, %v436_v32 }
 0x1b6   : > { %v454_v35 = vsel %vm438_vm2, %v435_v19, %v453_v34 }
 0x1b7   : > { %v455_v36 = vmul.f32 %v454_v35, %v454_v35 }
 0x1b9   : > { %456 = vst [vmem:[%s190_s28] sm:$0x1] %v455_v36 }
 0x1ba   : > { %673 = shalt.err (!%p670_p3)
}
 0x1bb   : > { %589 = dma.vmem_to_hbm [thread:$0]  (%p777_p5), %s469_s29, 16, %s471_s30, %s458_s5  }
 0x1bc PF: > { %p595_p4 = scmp.ge.s32.totalorder %s708_s18, 2  ;;  %s482_s12 = sand.u32 1, %s696_s15  }
 0x1bd   : > { %s483_s13 = scalar_lea.sflag [#allocation3], %s482_s12 }
 0x1be   : > { %p592_p7 = pnand %p595_p4, %p781_p6 }
 0x1c0   : > { %p593_p8 = pneg %p592_p7 }
 0x1c2   : > { %691 = dma.done.wait (%p593_p8), %s483_s13, 16  }
 0x1c3   : > { %693 = vsyncadd (%p593_p8), %s483_s13, 4294967280  ;;  %p14_p9 = scmp.ge.s32.totalorder %s764_s21, 4   ;;  %s948_s15 = smov %s700_s16 }
 0x1c4   : > { %s949_s16 = smov %s704_s17  ;;  %s950_s17 = smov %s775_s24 }
 0x1c5   : > { %s951_s18 = smov %s764_s21  ;;  %16 = sbr.rel (!%p14_p9) target bundleno = 3 (0x3), region = 71 }
 0x1ca   :  { %488 = vsyncpa [#allocation3], 1 }
 0x1cb   :  { %490 = vsyncpa [#allocation3 + $0x1], 1 }

</bundles_post_ra>
